<compile_context>
chip_gen: v5e
topology: v5e:2x2
jax: 0.10.0
libtpu: 0.0.40
codegen_flags: <defaults>
</compile_context>

<pallas_src>
import functools

import jax
import jax.numpy as jnp
from jax.experimental import pallas as pl
from jax.experimental.pallas import tpu as pltpu


def _quantize_kernel(scale2_ref, z_ref, cb_ref, nhcs_ref,
                     zq_ref, idx_ref, *maybe_prob_ref,
                     num_codes, matmul_dtype, with_probs):
    """One N-tile: scores, argmax quantization, (optional) posterior probs."""
    z = z_ref[...]                                     # (TN, D) f32
    cb = cb_ref[...]                                   # (K, D)  f32

    # cross = z @ cb^T expressed as trans_b on the MXU (no in-kernel cb.T).
    cross = jax.lax.dot_general(
        z.astype(matmul_dtype), cb.astype(matmul_dtype),
        dimension_numbers=(((1,), (1,)), ((), ())),
        preferred_element_type=jnp.float32)            # (TN, K)

    # score = z.e - 0.5||e||^2 ; argmax(score) == argmin ||z - e||^2.
    # (The per-row ||z||^2 constant is dropped: both the argmin and the
    #  posterior softmax are invariant to it, and dist is never returned.)
    score = cross + nhcs_ref[...]                      # (TN, K)

    lane_iota = jax.lax.broadcasted_iota(jnp.int32, score.shape, 1)
    max_s = jnp.max(score, axis=-1, keepdims=True)     # reused by softmax below
    cand = jnp.where(score >= max_s, lane_iota, num_codes)
    idx_col = jnp.min(cand, axis=-1, keepdims=True)    # ties -> smallest index
    one_hot = (lane_iota == idx_col).astype(jnp.float32)   # (TN, K)

    # Quantized vectors via one-hot gather on the MXU.
    zq_ref[...] = jnp.dot(one_hot, cb,
                          preferred_element_type=jnp.float32).astype(zq_ref.dtype)

    # Lane-dense code indices: (8,K) . (TN,K) contracted on K -> (8,TN); rows
    # are identical, row 0 is stored as a full-lane (1,TN) block.  No one_hot.T
    # transpose and no per-row masked stores.
    iota8 = jax.lax.broadcasted_iota(
        jnp.int32, (8, num_codes), 1).astype(jnp.float32)
    idx_rows = jax.lax.dot_general(
        iota8, one_hot, dimension_numbers=(((1,), (1,)), ((), ())),
        preferred_element_type=jnp.float32)
    idx_ref[...] = idx_rows[0:1, :].astype(jnp.int32)  # (1, TN)

    if with_probs:
        (prob_ref,) = maybe_prob_ref
        # softmax(-exp(q)*dist/T) == softmax(scale2*score) with scale2 > 0,
        # so max(logits) = scale2 * max_s and the max reduce is reused.
        scale2 = scale2_ref[0]                         # = 2*exp(param_q)/T
        e = jnp.exp((score - max_s) * scale2)
        denom = jnp.sum(e, axis=-1, keepdims=True)
        # EUP approx reciprocal: rows sum to 1 within ~1e-3 relative error.
        prob_ref[...] = (e * pl.reciprocal(denom, approx=True)
                         ).astype(prob_ref.dtype)


def _round_up(a, b):
    return ((a + b - 1) // b) * b


def base_quantizer_forward(z_from_encoder, param_q, codebook,
                           temperature=0.5, tile_n=1024,
                           probs_dtype=jnp.bfloat16,
                           matmul_dtype=jnp.float32,
                           return_probs=True):
    """z_from_encoder: (B, D, H, W) f32;  codebook: (K, D) f32;  param_q: scalar.

    Returns (z_q (B,D,H,W), indices (B,H,W) int32, probs (B,H,W,K) or None).
    matmul_dtype=jnp.bfloat16 trades a little argmin tie robustness for ~3x
    less MXU work (mostly relevant on v5e or large D).
    """
    B, D, H, W = z_from_encoder.shape
    K, Dc = codebook.shape
    assert D == Dc
    assert K < (1 << 24), "code indices travel through an f32 matmul"

    # glue: NCHW -> (N, D) flattened NHWC, lane-dense on D.
    # TODO(synk): accept an NHWC-flattened encoder output upstream to avoid
    #             this extra HBM transpose pass (and D=32 under-fills lanes;
    #             a 128-multiple dim_dict would make the z/z_q streams dense).
    z_flat = (jnp.transpose(z_from_encoder, (0, 2, 3, 1))
              .reshape(B * H * W, D).astype(jnp.float32))
    codebook = codebook.astype(jnp.float32)
    N = z_flat.shape[0]

    # Pad rows only to the 128 granularity (not tile_n); any ragged last tile
    # is handled by Pallas block masking.
    n_pad = _round_up(N, 128)
    if n_pad != N:
        z_flat = jnp.pad(z_flat, ((0, n_pad - N), (0, 0)))

    # Tile sizing: as big as the HBM roofline likes, but
    #  * grid_n >= 2 whenever the problem allows (v7x megacore),
    #  * (tile_n, K) f32 temporaries + double-buffered I/O stay under ~14 MiB
    #    of VMEM (safe on every generation's scoped default).
    tile_n = max(128, min(int(tile_n), n_pad))
    if n_pad >= 256:
        tile_n = min(tile_n, _round_up(n_pad // 2, 128))

    def _vmem_bytes(tn):
        io = (2 * tn * D * 4                      # z in   (double-buffered)
              + 2 * tn * D * 4                    # z_q out
              + 2 * tn * 4                        # idx out
              + K * D * 4 + max(K, 128) * 4)      # codebook + -0.5||e||^2
        if return_probs:
            io += 2 * tn * K * jnp.dtype(probs_dtype).itemsize
        tmp = 4 * tn * max(K, 128) * 4            # score/one_hot/e/misc f32
        return io + tmp

    while tile_n > 128 and _vmem_bytes(tile_n) > (14 << 20):
        tile_n = max(128, _round_up(tile_n // 2, 128))

    grid_n = pl.cdiv(n_pad, tile_n)

    # Folded constants (hoisted out of the kernel).
    neg_half_cb_sq = (-0.5 * jnp.sum(codebook * codebook, axis=-1,
                                     keepdims=True)).T            # (1, K)
    scale2 = (2.0 * jnp.exp(jnp.asarray(param_q, jnp.float32))
              / jnp.float32(temperature)).reshape(1)               # SMEM scalar

    kernel = functools.partial(_quantize_kernel, num_codes=K,
                               matmul_dtype=matmul_dtype,
                               with_probs=return_probs)

    out_specs = [
        pl.BlockSpec((tile_n, D), lambda i: (i, 0)),    # z_q
        pl.BlockSpec((1, tile_n), lambda i: (0, i)),    # code index (lane-dense)
    ]
    out_shape = [
        jax.ShapeDtypeStruct((n_pad, D), jnp.float32),
        jax.ShapeDtypeStruct((1, n_pad), jnp.int32),
    ]
    if return_probs:
        out_specs.append(pl.BlockSpec((tile_n, K), lambda i: (i, 0)))
        out_shape.append(jax.ShapeDtypeStruct((n_pad, K), probs_dtype))

    outs = pl.pallas_call(
        kernel,
        grid=(grid_n,),
        in_specs=[
            pl.BlockSpec(memory_space=pltpu.MemorySpace.SMEM),   # scale2
            pl.BlockSpec((tile_n, D), lambda i: (i, 0)),         # z tile
            pl.BlockSpec((K, D), lambda i: (0, 0)),              # codebook
            pl.BlockSpec((1, K), lambda i: (0, 0)),              # -0.5||e||^2
        ],
        out_specs=out_specs,
        out_shape=out_shape,
        compiler_params=pltpu.CompilerParams(
            dimension_semantics=("parallel",)),
    )(scale2, z_flat, codebook, neg_half_cb_sq)

    zq_flat, idx_row = outs[0], outs[1]
    # Drop padded rows only when padding was actually added (at aligned sizes
    # these slices disappear; the reshape below is the only consumer pass).
    if n_pad != N:
        zq_flat = zq_flat[:N]
        idx_row = idx_row[:, :N]
    z_q = zq_flat.reshape(B, H, W, D).transpose(0, 3, 1, 2)
    indices = idx_row[0].reshape(B, H, W)

    if not return_probs:
        return z_q, indices, None
    probs_flat = outs[2]
    if n_pad != N:
        probs_flat = probs_flat[:N]
    probs = probs_flat.reshape(B, H, W, K)
    return z_q, indices, probs


def _reference(z_from_encoder, param_q, codebook, temperature):
    B, D, H, W = z_from_encoder.shape
    z = jnp.transpose(z_from_encoder, (0, 2, 3, 1)).reshape(-1, D)
    dist = (jnp.sum(z * z, axis=-1, keepdims=True)
            - 2.0 * z @ codebook.T
            + jnp.sum(codebook * codebook, axis=-1)[None, :])
    idx = jnp.argmin(dist, axis=-1)
    zq = codebook[idx].reshape(B, H, W, D).transpose(0, 3, 1, 2)
    probs = jax.nn.softmax(-jnp.exp(param_q) * dist / temperature, axis=-1)
    return zq, idx.reshape(B, H, W), probs.reshape(B, H, W, -1)


if __name__ == "__main__":
    # "module __init__" sizes: size_dict = number of codes, dim_dict = code dim.
    size_dict = 128   # K
    dim_dict = 32     # D
    temperature = 0.5

    B, H, W = 2, 8, 8

    key = jax.random.PRNGKey(0)
    k_z, k_cb, k_q = jax.random.split(key, 3)
    z_from_encoder = jax.random.normal(k_z, (B, dim_dict, H, W), jnp.float32)
    codebook = jax.random.normal(k_cb, (size_dict, dim_dict), jnp.float32) * 0.1
    param_q = jax.random.normal(k_q, ()) * 0.01   # log-precision scalar

    z_q, indices, probs = base_quantizer_forward(
        z_from_encoder, param_q, codebook, temperature=temperature)
    jax.block_until_ready((z_q, indices, probs))

    # sanity check against pure-JAX reference
    zq_ref, idx_ref, probs_ref = _reference(z_from_encoder, param_q, codebook,
                                            temperature)
    assert jnp.allclose(z_q, zq_ref, atol=1e-4, rtol=1e-4)
    assert jnp.all(indices == idx_ref)
    # probs are emitted in bf16 + approx reciprocal -> looser tolerance vs f32
    assert jnp.allclose(probs.astype(jnp.float32), probs_ref, atol=1e-2, rtol=1e-2)

    # deterministic-only path (flg_quant_det): skips the probs stream entirely
    z_q_det, idx_det, none_probs = base_quantizer_forward(
        z_from_encoder, param_q, codebook, temperature=temperature,
        return_probs=False)
    jax.block_until_ready((z_q_det, idx_det))
    assert none_probs is None
    assert jnp.all(idx_det == idx_ref)

    print("KERNEL_OK")
</pallas_src>

<mosaic_0001>
module attributes {stable_mosaic.version = 11 : i64} {
  func.func @_quantize_kernel(%arg0: i32, %arg1: memref<1xf32, #tpu.memory_space<smem>>, %arg2: memref<128x32xf32, #tpu.memory_space<vmem>>, %arg3: memref<128x32xf32, #tpu.memory_space<vmem>>, %arg4: memref<1x128xf32, #tpu.memory_space<vmem>>, %arg5: memref<128x32xf32, #tpu.memory_space<vmem>>, %arg6: memref<1x128xi32, #tpu.memory_space<vmem>>, %arg7: memref<128x128xbf16, #tpu.memory_space<vmem>>) attributes {dimension_semantics = [#tpu.dimension_semantics<parallel>], iteration_bounds = array<i64: 1>, scalar_prefetch = 0 : i64, scratch_operands = 0 : i64, tpu.core_type = #tpu.core_type<tc>, window_params = [{transform_indices = @transform_0, window_bounds = array<i64: 1>}, {transform_indices = @transform_1, window_bounds = array<i64: 128, 32>}, {pipeline_mode = #tpu.pipeline_mode<synchronous>, transform_indices = @transform_2, window_bounds = array<i64: 128, 32>}, {pipeline_mode = #tpu.pipeline_mode<synchronous>, transform_indices = @transform_3, window_bounds = array<i64: 1, 128>}, {transform_indices = @transform_4, window_bounds = array<i64: 128, 32>}, {transform_indices = @transform_5, window_bounds = array<i64: 1, 128>}, {transform_indices = @transform_6, window_bounds = array<i64: 128, 128>}]} {
    %c0 = arith.constant 0 : index
    %c0_0 = arith.constant 0 : index
    %0 = vector.load %arg2[%c0, %c0_0] : memref<128x32xf32, #tpu.memory_space<vmem>>, vector<128x32xf32>
    %c0_1 = arith.constant 0 : index
    %c0_2 = arith.constant 0 : index
    %1 = vector.load %arg3[%c0_1, %c0_2] : memref<128x32xf32, #tpu.memory_space<vmem>>, vector<128x32xf32>
    %cst = arith.constant dense<0.000000e+00> : vector<128x128xf32>
    %2 = tpu.matmul %0, %1, %cst {dimension_numbers = #tpu.dot_dimension_numbers<[1], [1], [0], [0], [0, 0, 1, 0], [], []>} : vector<128x32xf32>, vector<128x32xf32>, vector<128x128xf32> -> vector<128x128xf32>
    %c0_3 = arith.constant 0 : index
    %c0_4 = arith.constant 0 : index
    %3 = vector.load %arg4[%c0_3, %c0_4] : memref<1x128xf32, #tpu.memory_space<vmem>>, vector<1x128xf32>
    %4 = vector.broadcast %3 : vector<1x128xf32> to vector<128x128xf32>
    %5 = arith.addf %2, %4 : vector<128x128xf32>
    %6 = tpu.iota {dimensions = array<i32: 1>} : vector<128x128xi32>
    %cst_5 = arith.constant dense<0xFF800000> : vector<128xf32>
    %7 = vector.multi_reduction <maximumf>, %5, %cst_5 [1] : vector<128x128xf32> to vector<128xf32>
    %8 = vector.shape_cast %7 : vector<128xf32> to vector<128x1xf32>
    %9 = vector.broadcast %8 : vector<128x1xf32> to vector<128x128xf32>
    %10 = arith.cmpf oge, %5, %9 : vector<128x128xf32>
    %c128_i32 = arith.constant 128 : i32
    %11 = vector.broadcast %c128_i32 : i32 to vector<128x128xi32>
    %12 = arith.select %10, %6, %11 : vector<128x128xi1>, vector<128x128xi32>
    %cst_6 = arith.constant dense<2147483647> : vector<128xi32>
    %13 = vector.multi_reduction <minsi>, %12, %cst_6 [1] : vector<128x128xi32> to vector<128xi32>
    %14 = vector.shape_cast %13 : vector<128xi32> to vector<128x1xi32>
    %15 = vector.broadcast %14 : vector<128x1xi32> to vector<128x128xi32>
    %16 = arith.cmpi eq, %6, %15 : vector<128x128xi32>
    %17 = arith.extui %16 : vector<128x128xi1> to vector<128x128xi32>
    %18 = arith.sitofp %17 : vector<128x128xi32> to vector<128x128xf32>
    %cst_7 = arith.constant dense<0.000000e+00> : vector<128x32xf32>
    %19 = tpu.matmul %18, %1, %cst_7 {dimension_numbers = #tpu.dot_dimension_numbers<[1], [0], [0], [1], [0, 0, 1, 1], [], []>} : vector<128x128xf32>, vector<128x32xf32>, vector<128x32xf32> -> vector<128x32xf32>
    %c0_8 = arith.constant 0 : index
    %c0_9 = arith.constant 0 : index
    %20 = vector.load %arg5[%c0_8, %c0_9] : memref<128x32xf32, #tpu.memory_space<vmem>>, vector<128x32xf32>
    tpu.vector_store %arg5[%c0_8, %c0_9], %19 {strides = array<i32>} : memref<128x32xf32, #tpu.memory_space<vmem>>, vector<128x32xf32>,
    %21 = tpu.iota {dimensions = array<i32: 1>} : vector<8x128xi32>
    %22 = arith.sitofp %21 : vector<8x128xi32> to vector<8x128xf32>
    %cst_10 = arith.constant dense<0.000000e+00> : vector<8x128xf32>
    %23 = tpu.matmul %22, %18, %cst_10 {dimension_numbers = #tpu.dot_dimension_numbers<[1], [1], [0], [0], [0, 0, 1, 0], [], []>} : vector<8x128xf32>, vector<128x128xf32>, vector<8x128xf32> -> vector<8x128xf32>
    %24 = vector.extract_strided_slice %23 {offsets = [0, 0], sizes = [1, 128], strides = [1, 1]} : vector<8x128xf32> to vector<1x128xf32>
    %25 = arith.fptosi %24 : vector<1x128xf32> to vector<1x128xi32>
    %c0_11 = arith.constant 0 : index
    %c0_12 = arith.constant 0 : index
    %26 = vector.load %arg6[%c0_11, %c0_12] : memref<1x128xi32, #tpu.memory_space<vmem>>, vector<1x128xi32>
    tpu.vector_store %arg6[%c0_11, %c0_12], %25 {strides = array<i32>} : memref<1x128xi32, #tpu.memory_space<vmem>>, vector<1x128xi32>,
    %c0_13 = arith.constant 0 : index
    %27 = memref.load %arg1[%c0_13] : memref<1xf32, #tpu.memory_space<smem>>
    %28 = vector.broadcast %8 : vector<128x1xf32> to vector<128x128xf32>
    %29 = arith.subf %5, %28 : vector<128x128xf32>
    %30 = vector.broadcast %27 : f32 to vector<128x128xf32>
    %31 = arith.mulf %29, %30 : vector<128x128xf32>
    %32 = math.exp %31 : vector<128x128xf32>
    %cst_14 = arith.constant dense<0.000000e+00> : vector<128xf32>
    %33 = vector.multi_reduction <add>, %32, %cst_14 [1] : vector<128x128xf32> to vector<128xf32>
    %34 = vector.shape_cast %33 : vector<128xf32> to vector<128x1xf32>
    %35 = tpu.reciprocal %34 {approx = true} : vector<128x1xf32> -> vector<128x1xf32>
    %36 = vector.broadcast %35 : vector<128x1xf32> to vector<128x128xf32>
    %37 = arith.mulf %32, %36 : vector<128x128xf32>
    %38 = arith.truncf %37 : vector<128x128xf32> to vector<128x128xbf16>
    %c0_15 = arith.constant 0 : index
    %c0_16 = arith.constant 0 : index
    %39 = vector.load %arg7[%c0_15, %c0_16] : memref<128x128xbf16, #tpu.memory_space<vmem>>, vector<128x128xbf16>
    tpu.vector_store %arg7[%c0_15, %c0_16], %38 {strides = array<i32>} : memref<128x128xbf16, #tpu.memory_space<vmem>>, vector<128x128xbf16>,
    return
  }
  func.func @transform_0(%arg0: i32) -> i32 {
    %c0_i32 = arith.constant 0 : i32
    %c0_i32_0 = arith.constant 0 : i32
    return %c0_i32 : i32
  }
  func.func @transform_1(%arg0: i32) -> (i32, i32) {
    %c0_i32 = arith.constant 0 : i32
    %c0_i32_0 = arith.constant 0 : i32
    return %arg0, %c0_i32 : i32, i32
  }
  func.func @transform_2(%arg0: i32) -> (i32, i32) {
    %c0_i32 = arith.constant 0 : i32
    %c0_i32_0 = arith.constant 0 : i32
    %c0_i32_1 = arith.constant 0 : i32
    return %c0_i32, %c0_i32_0 : i32, i32
  }
  func.func @transform_3(%arg0: i32) -> (i32, i32) {
    %c0_i32 = arith.constant 0 : i32
    %c0_i32_0 = arith.constant 0 : i32
    %c0_i32_1 = arith.constant 0 : i32
    return %c0_i32, %c0_i32_0 : i32, i32
  }
  func.func @transform_4(%arg0: i32) -> (i32, i32) {
    %c0_i32 = arith.constant 0 : i32
    %c0_i32_0 = arith.constant 0 : i32
    return %arg0, %c0_i32 : i32, i32
  }
  func.func @transform_5(%arg0: i32) -> (i32, i32) {
    %c0_i32 = arith.constant 0 : i32
    %c0_i32_0 = arith.constant 0 : i32
    return %c0_i32, %arg0 : i32, i32
  }
  func.func @transform_6(%arg0: i32) -> (i32, i32) {
    %c0_i32 = arith.constant 0 : i32
    %c0_i32_0 = arith.constant 0 : i32
    return %arg0, %c0_i32 : i32, i32
  }
}

</mosaic_0001>

<bundles_post_ra>
// kernel: tpu_custom_call.1
= control target key start
LH: loop header
LB: loop body
LE: loop exit
PB: predicated region body
PF: predicated region fallthrough
CT: control target
= control target key end

     0   :  { %13 = vsyncpa [#allocation4], 0  ;;  %vm59_vm0 = vcmask 261120   ;;  %s2003_s0 = inlined_call_operand.<no memory space> [shape: f32[1], index: 0, kind: input, shape index: {}]   ;;  %s2004_s1 = inlined_call_operand.vmem [shape: f32[128,32], index: 1, kind: input, shape index: {}]   ;;  %s2005_s2 = inlined_call_operand.vmem [shape: f32[128,32], index: 2, kind: input, shape index: {}]   ;;  %s2006_s3 = inlined_call_operand.vmem [shape: f32[1,128], index: 3, kind: input, shape index: {}]   ;;  %s2007_s4 = inlined_call_operand.vmem [shape: f32[128,32], index: 4, kind: output, shape index: {0}]   ;;  %s2008_s5 = inlined_call_operand.hbm [shape: s32[1,128], index: 5, kind: output, shape index: {1}]   ;;  %s2009_s6 = inlined_call_operand.hbm [shape: bf16[128,128], index: 6, kind: output, shape index: {2}]  }
   0x1   :  { %v54_v0 = vld [vmem:[%s2005_s2 + $0x78] sm:$0xff]  ;;  %v53_v1 = vld [vmem:[%s2005_s2 + $0x70] sm:$0xff] }
   0x2   :  { %863 = vmatpush.xpose.msk.msra.mxu0 %vm59_vm0, %v54_v0  ;;  %990 = vmatpush.xpose.msk.msra.mxu3 %vm59_vm0, %v54_v0 }
   0x3   :  { %559 = vmatpush.msra.mxu1 %v54_v0 }
   0x4   :  { %14 = vsyncpa [#allocation6], 0  ;;  %v52_v2 = vld [vmem:[%s2005_s2 + $0x68] sm:$0xff]  ;;  %v51_v3 = vld [vmem:[%s2005_s2 + $0x60] sm:$0xff]  ;;  %s1134_s26 = smov [#allocation5]   ;;  %s844_s29 = sshll.u32 %s2009_s6, 4  ;;  %s845_s29 = int_to_ptr.hbm [resolvable:$true] %s844_s29 }
   0x5   :  { %560 = vmatpush.msra.mxu1 %v53_v1  ;;  %v50_v4 = vld [vmem:[%s2005_s2 + $0x58] sm:$0xff]  ;;  %v49_v5 = vld [vmem:[%s2005_s2 + $0x50] sm:$0xff]  ;;  %v48_v6 = vld [vmem:[%s2005_s2 + $0x48] sm:$0xff]  ;;  %s842_s27 = sshll.u32 %s1134_s26, 4  ;;  %s1135_s30 = smov 64   ;;  %s843_s27 = int_to_ptr.vmem [resolvable:$true] %s842_s27 }
   0x6   :  { %864 = vmatpush.xpose.msk.msra.mxu0 %vm59_vm0, %v53_v1  ;;  %991 = vmatpush.xpose.msk.msra.mxu3 %vm59_vm0, %v53_v1  ;;  %v47_v7 = vld [vmem:[%s2005_s2 + $0x40] sm:$0xff]  ;;  %v46_v8 = vld [vmem:[%s2005_s2 + $0x38] sm:$0xff]  ;;  %v45_v9 = vld [vmem:[%s2005_s2 + $0x30] sm:$0xff]  ;;  %v221_v1 = vlaneseq  ;;  %s1136_s7 = smov 4   ;;  %s1137_s20 = smov [#allocation3]  }
   0x7   :  { %561 = vmatpush.msra.mxu1 %v52_v2  ;;  %v44_v10 = vld [vmem:[%s2005_s2 + $0x28] sm:$0xff]  ;;  %v43_v11 = vld [vmem:[%s2005_s2 + $0x20] sm:$0xff]  ;;  %v42_v12 = vld [vmem:[%s2005_s2 + $0x18] sm:$0xff]  ;;  %s832_s21 = sshll.u32 %s1137_s20, 4  ;;  %s834_s24 = sshll.u32 %s2008_s5, 4  ;;  %s833_s21 = int_to_ptr.vmem [resolvable:$true] %s832_s21  ;;  %s835_s24 = int_to_ptr.hbm [resolvable:$true] %s834_s24 }
   0x8   :  { %v41_v13 = vld [vmem:[%s2005_s2 + $0x10] sm:$0xff]  ;;  %v40_v14 = vld [vmem:[%s2005_s2 + $0x8] sm:$0xff]  ;;  %v39_v15 = vld [vmem:[%s2005_s2] sm:$0xff] }
   0x9   :  { %562 = vmatpush.msra.mxu1 %v51_v3  ;;  %v23_v16 = vld [vmem:[%s2004_s1] sm:$0xff]  ;;  %v24_v18 = vld [vmem:[%s2004_s1 + $0x8] sm:$0xff]  ;;  %v25_v20 = vld [vmem:[%s2004_s1 + $0x10] sm:$0xff] }
   0xa   :  { %865 = vmatpush.xpose.msk.msra.mxu0 %vm59_vm0, %v52_v2  ;;  %992 = vmatpush.xpose.msk.msra.mxu3 %vm59_vm0, %v52_v2  ;;  %v31_v17 = vld [vmem:[%s2004_s1 + $0x40] sm:$0xff]  ;;  %v32_v19 = vld [vmem:[%s2004_s1 + $0x48] sm:$0xff]  ;;  %v33_v21 = vld [vmem:[%s2004_s1 + $0x50] sm:$0xff]  ;;  %v1363_v2 = vand.u32 127, %v221_v1 }
   0xb   :  { %563 = vmatpush.msra.mxu1 %v50_v4  ;;  %v26_v22 = vld [vmem:[%s2004_s1 + $0x18] sm:$0xff]  ;;  %v27_v24 = vld [vmem:[%s2004_s1 + $0x20] sm:$0xff]  ;;  %v28_v26 = vld [vmem:[%s2004_s1 + $0x28] sm:$0xff] }
   0xc   :  { %v34_v23 = vld [vmem:[%s2004_s1 + $0x58] sm:$0xff]  ;;  %v35_v25 = vld [vmem:[%s2004_s1 + $0x60] sm:$0xff]  ;;  %v36_v27 = vld [vmem:[%s2004_s1 + $0x68] sm:$0xff] }
   0xd   :  { %564 = vmatpush.msra.mxu1 %v49_v5  ;;  %v29_v28 = vld [vmem:[%s2004_s1 + $0x30] sm:$0xff]  ;;  %v38_v30 = vld [vmem:[%s2004_s1 + $0x78] sm:$0xff]  ;;  %v1016_v32 = vld [vmem:[%s2006_s3] ss:$0 sm:$0xff] }
   0xe   :  { %866 = vmatpush.xpose.msk.msra.mxu0 %vm59_vm0, %v51_v3  ;;  %993 = vmatpush.xpose.msk.msra.mxu3 %vm59_vm0, %v51_v3  ;;  %v37_v29 = vld [vmem:[%s2004_s1 + $0x70] sm:$0xff]  ;;  %v30_v31 = vld [vmem:[%s2004_s1 + $0x38] sm:$0xff] }
   0xf   :  { %565 = vmatpush.msra.mxu1 %v48_v6 }
  0x11   :  { %566 = vmatpush.msra.mxu1 %v47_v7 }
  0x12   :  { %867 = vmatpush.xpose.msk.msra.mxu0 %vm59_vm0, %v50_v4  ;;  %994 = vmatpush.xpose.msk.msra.mxu3 %vm59_vm0, %v50_v4 }
  0x13   :  { %567 = vmatpush.msra.mxu1 %v46_v8 }
  0x15   :  { %568 = vmatpush.msra.mxu1 %v45_v9 }
  0x16   :  { %868 = vmatpush.xpose.msk.msra.mxu0 %vm59_vm0, %v49_v5  ;;  %995 = vmatpush.xpose.msk.msra.mxu3 %vm59_vm0, %v49_v5 }
  0x17   :  { %569 = vmatpush.msra.mxu1 %v44_v10 }
  0x19   :  { %570 = vmatpush.msra.mxu1 %v43_v11 }
  0x1a   :  { %869 = vmatpush.xpose.msk.msra.mxu0 %vm59_vm0, %v48_v6  ;;  %996 = vmatpush.xpose.msk.msra.mxu3 %vm59_vm0, %v48_v6 }
  0x1b   :  { %571 = vmatpush.msra.mxu1 %v42_v12 }
  0x1d   :  { %572 = vmatpush.msra.mxu1 %v41_v13 }
  0x1e   :  { %870 = vmatpush.xpose.msk.msra.mxu0 %vm59_vm0, %v47_v7  ;;  %997 = vmatpush.xpose.msk.msra.mxu3 %vm59_vm0, %v47_v7 }
  0x1f   :  { %573 = vmatpush.msra.mxu1 %v40_v14 }
  0x21   :  { %574 = vmatpush.msra.mxu1 %v39_v15 }
  0x22   :  { %871 = vmatpush.xpose.msk.msra.mxu0 %vm59_vm0, %v46_v8  ;;  %998 = vmatpush.xpose.msk.msra.mxu3 %vm59_vm0, %v46_v8 }
  0x26   :  { %872 = vmatpush.xpose.msk.msra.mxu0 %vm59_vm0, %v45_v9  ;;  %999 = vmatpush.xpose.msk.msra.mxu3 %vm59_vm0, %v45_v9 }
  0x2a   :  { %873 = vmatpush.xpose.msk.msra.mxu0 %vm59_vm0, %v44_v10  ;;  %1000 = vmatpush.xpose.msk.msra.mxu3 %vm59_vm0, %v44_v10 }
  0x2e   :  { %874 = vmatpush.xpose.msk.msra.mxu0 %vm59_vm0, %v43_v11  ;;  %1001 = vmatpush.xpose.msk.msra.mxu3 %vm59_vm0, %v43_v11 }
  0x32   :  { %875 = vmatpush.xpose.msk.msra.mxu0 %vm59_vm0, %v42_v12  ;;  %1002 = vmatpush.xpose.msk.msra.mxu3 %vm59_vm0, %v42_v12 }
  0x36   :  { %876 = vmatpush.xpose.msk.msra.mxu0 %vm59_vm0, %v41_v13  ;;  %1003 = vmatpush.xpose.msk.msra.mxu3 %vm59_vm0, %v41_v13 }
  0x3a   :  { %877 = vmatpush.xpose.msk.msra.mxu0 %vm59_vm0, %v40_v14  ;;  %1004 = vmatpush.xpose.msk.msra.mxu3 %vm59_vm0, %v40_v14 }
  0x3e   :  { %878 = vmatpush.xpose.msk.msra.mxu0 %vm59_vm0, %v39_v15  ;;  %1005 = vmatpush.xpose.msk.msra.mxu3 %vm59_vm0, %v39_v15 }
  0x41   :  { %879 = vmatmul.msk.f32.vlgmr.msra.gmra.mxu0 %vm59_vm0, %v23_v16  ;;  %887 = vmatmul.msk.f32.vlgmr.msra.gmra.mxu3 %vm59_vm0, %v31_v17 }
  0x49   :  { %880 = vmatmul.msk.f32.gmra.mxu0 %vm59_vm0, %v24_v18  ;;  %888 = vmatmul.msk.f32.gmra.mxu3 %vm59_vm0, %v32_v19 }
  0x51   :  { %881 = vmatmul.msk.f32.gmra.mxu0 %vm59_vm0, %v25_v20  ;;  %889 = vmatmul.msk.f32.gmra.mxu3 %vm59_vm0, %v33_v21 }
  0x59   :  { %882 = vmatmul.msk.f32.gmra.mxu0 %vm59_vm0, %v26_v22  ;;  %890 = vmatmul.msk.f32.gmra.mxu3 %vm59_vm0, %v34_v23 }
  0x61   :  { %883 = vmatmul.msk.f32.gmra.mxu0 %vm59_vm0, %v27_v24  ;;  %891 = vmatmul.msk.f32.gmra.mxu3 %vm59_vm0, %v35_v25 }
  0x69   :  { %884 = vmatmul.msk.f32.gmra.mxu0 %vm59_vm0, %v28_v26  ;;  %892 = vmatmul.msk.f32.gmra.mxu3 %vm59_vm0, %v36_v27 }
  0x71   :  { %885 = vmatmul.msk.f32.gmra.mxu0 %vm59_vm0, %v29_v28  ;;  %893 = vmatmul.msk.f32.gmra.mxu3 %vm59_vm0, %v37_v29 }
  0x79   :  { %894 = vmatmul.msk.f32.gmra.mxu3 %vm59_vm0, %v38_v30  ;;  %886 = vmatmul.msk.f32.gmra.mxu0 %vm59_vm0, %v30_v31 }
  0xbe   :  { %v173_v33 = vpop.f32.mrf.mxu0 }
  0xbf   :  { %v1320_v34 = vadd.f32 %v1016_v32, %v173_v33 }
  0xc1   :  { %223 = vmax.xlane.f32.xlu0 %v1320_v34 }
  0xc4   :  { %v197_v35 = vpop.f32.mrf.mxu3 }
  0xc5   :  { %v1323_v36 = vadd.f32 %v1016_v32, %v197_v35 }
  0xc6   :  { %v176_v37 = vpop.f32.mrf.mxu0 }
  0xc7   :  { %v1325_v38 = vadd.f32 %v1016_v32, %v176_v37 }
  0xc9   :  { %225 = vmax.xlane.f32.xlu0 %v1325_v38 }
  0xcc   :  { %v200_v39 = vpop.f32.mrf.mxu3 }
  0xcd   :  { %v1328_v40 = vadd.f32 %v1016_v32, %v200_v39 }
  0xce   :  { %v179_v41 = vpop.f32.mrf.mxu0 }
  0xcf   :  { %v1330_v42 = vadd.f32 %v1016_v32, %v179_v41 }
  0xd1   :  { %227 = vmax.xlane.f32.xlu1 %v1330_v42 }
  0xd4   :  { %v203_v43 = vpop.f32.mrf.mxu3 }
  0xd5   :  { %v1333_v44 = vadd.f32 %v1016_v32, %v203_v43 }
  0xd6   :  { %v182_v45 = vpop.f32.mrf.mxu0 }
  0xd7   :  { %v1335_v46 = vadd.f32 %v1016_v32, %v182_v45 }
  0xd9   :  { %229 = vmax.xlane.f32.xlu1 %v1335_v46 }
  0xdc   :  { %v206_v47 = vpop.f32.mrf.mxu3 }
  0xdd   :  { %v1338_v48 = vadd.f32 %v1016_v32, %v206_v47 }
  0xde   :  { %v185_v49 = vpop.f32.mrf.mxu0 }
  0xdf   :  { %2018 = vst [vmem:[#allocation9_spill] sm:$0xff] %v1338_v48  ;;  %v1340_v50 = vadd.f32 %v1016_v32, %v185_v49 }
  0xe1   :  { %231 = vmax.xlane.f32.xlu2 %v1340_v50 }
  0xe4   :  { %v209_v51 = vpop.f32.mrf.mxu3 }
  0xe5   :  { %v1343_v52 = vadd.f32 %v1016_v32, %v209_v51 }
  0xe6   :  { %v188_v53 = vpop.f32.mrf.mxu0 }
  0xe7   :  { %v1345_v54 = vadd.f32 %v1016_v32, %v188_v53 }
  0xe9   :  { %233 = vmax.xlane.f32.xlu2 %v1345_v54 }
  0xec   :  { %v212_v55 = vpop.f32.mrf.mxu3 }
  0xed   :  { %v1348_v56 = vadd.f32 %v1016_v32, %v212_v55 }
  0xee   :  { %v191_v57 = vpop.f32.mrf.mxu0 }
  0xef   :  { %2019 = vst [vmem:[#allocation10_spill] sm:$0xff] %v1348_v56  ;;  %v1350_v58 = vadd.f32 %v1016_v32, %v191_v57  ;;  %249 = vmax.xlane.f32.xlu1 %v1348_v56 }
  0xf1   :  { %235 = vmax.xlane.f32.xlu2 %v1350_v58 }
  0xf4   :  { %v215_v59 = vpop.f32.mrf.mxu3 }
  0xf5   :  { %v1354_v60 = vadd.f32 %v1016_v32, %v215_v59 }
  0xf6   :  { %v194_v63 = vpop.f32.mrf.mxu0 }
  0xf7   :  { %2020 = vst [vmem:[#allocation11_spill] sm:$0xff] %v1354_v60  ;;  %251 = vmax.xlane.f32.xlu0 %v1354_v60  ;;  %v1360_v0 = vadd.f32 %v1016_v32, %v194_v63 }
  0xfc   :  { %v218_v61 = vpop.f32.mrf.mxu3 }
  0xfd   :  { %v1357_v62 = vadd.f32 %v1016_v32, %v218_v61 }
  0xff   :  { %2021 = vst [vmem:[#allocation12_spill] sm:$0xff] %v1357_v62  ;;  %253 = vmax.xlane.f32.xlu0 %v1357_v62 }
 0x107   :  { %237 = vmax.xlane.f32.xlu0 %v1360_v0 }
 0x134   :  { %v1365_v3 = vpop.xlane.xlu0 %223 }
 0x135   :  { %vm255_vm1 = vcmp.ge.f32.partialorder %v1320_v34, %v1365_v3 }
 0x136   :  { %v1370_v4 = vsel %vm255_vm1, %v1363_v2, 128 }
 0x137   :  { %v288_v5 = vshra.s32 %v1370_v4, 16  ;;  %v287_v55 = vand.u32 65535, %v1370_v4 }
 0x139   :  { %v1373_v6 = vcvt.s32.f32 %v288_v5  ;;  %v289_v59 = vcvt.s32.f32 %v287_v55 }
 0x13b   :  { %291 = vmin.xlane.f32.xlu1 %v1373_v6 }
 0x13c   :  { %v1376_v7 = vpop.xlane.xlu0 %225 }
 0x13d   :  { %vm256_vm2 = vcmp.ge.f32.partialorder %v1325_v38, %v1376_v7 }
 0x13e   :  { %v1381_v8 = vsel %vm256_vm2, %v1363_v2, 128 }
 0x13f   :  { %v302_v9 = vshra.s32 %v1381_v8, 16  ;;  %v301_v1 = vand.u32 65535, %v1381_v8 }
 0x141   :  { %v1384_v10 = vcvt.s32.f32 %v302_v9 }
 0x143   :  { %247 = vmax.xlane.f32.xlu1 %v1343_v52  ;;  %305 = vmin.xlane.f32.xlu2 %v1384_v10 }
 0x144   :  { %v1388_v11 = vpop.xlane.xlu1 %227 }
 0x145   :  { %vm257_vm3 = vcmp.ge.f32.partialorder %v1330_v42, %v1388_v11 }
 0x146   :  { %v1393_v12 = vsel %vm257_vm3, %v1363_v2, 128 }
 0x147   :  { %v316_v13 = vshra.s32 %v1393_v12, 16  ;;  %v315_v8 = vand.u32 65535, %v1393_v12 }
 0x149   :  { %v1396_v14 = vcvt.s32.f32 %v316_v13  ;;  %v303_v13 = vcvt.s32.f32 %v301_v1 }
 0x14b   :  { %319 = vmin.xlane.f32.xlu0 %v1396_v14  ;;  %239 = vmax.xlane.f32.xlu1 %v1323_v36 }
 0x14c   :  { %245 = vmax.xlane.f32.xlu2 %v1338_v48  ;;  %v1401_v15 = vpop.xlane.xlu1 %229 }
 0x14d   :  { %vm258_vm4 = vcmp.ge.f32.partialorder %v1335_v46, %v1401_v15 }
 0x14e   :  { %v1406_v16 = vsel %vm258_vm4, %v1363_v2, 128 }
 0x14f   :  { %v330_v17 = vshra.s32 %v1406_v16, 16 }
 0x151   :  { %v1409_v18 = vcvt.s32.f32 %v330_v17 }
 0x153   :  { %241 = vmax.xlane.f32.xlu0 %v1328_v40  ;;  %333 = vmin.xlane.f32.xlu1 %v1409_v18 }
 0x154   :  { %243 = vmax.xlane.f32.xlu2 %v1333_v44  ;;  %v1414_v19 = vpop.xlane.xlu2 %231 }
 0x155   :  { %vm259_vm5 = vcmp.ge.f32.partialorder %v1340_v50, %v1414_v19 }
 0x156   :  { %v1419_v20 = vsel %vm259_vm5, %v1363_v2, 128 }
 0x157   :  { %v344_v21 = vshra.s32 %v1419_v20, 16 }
 0x159   :  { %v1422_v22 = vcvt.s32.f32 %v344_v21 }
 0x15c   :  { %347 = vmin.xlane.f32.xlu2 %v1422_v22  ;;  %v1425_v23 = vpop.xlane.xlu2 %233 }
 0x15d   :  { %vm260_vm6 = vcmp.ge.f32.partialorder %v1345_v54, %v1425_v23 }
 0x15e   :  { %v1430_v24 = vsel %vm260_vm6, %v1363_v2, 128 }
 0x15f   :  { %v358_v25 = vshra.s32 %v1430_v24, 16 }
 0x161   :  { %v1433_v26 = vcvt.s32.f32 %v358_v25 }
 0x162   :  { %v1436_v27 = vpop.xlane.xlu1 %249 }
 0x163   :  { %361 = vmin.xlane.f32.xlu0 %v1433_v26  ;;  %2022 = vst [vmem:[#allocation13_spill] sm:$0xff] %v1436_v27  ;;  %vm268_vm8 = vcmp.ge.f32.partialorder %v1348_v56, %v1436_v27  ;;  %v343_v56 = vand.u32 65535, %v1419_v20 }
 0x164   :  { %v1438_v28 = vpop.xlane.xlu2 %235  ;;  %v1451_v32 = vsel %vm268_vm8, %v1363_v2, 128 }
 0x165   :  { %vm261_vm7 = vcmp.ge.f32.partialorder %v1350_v58, %v1438_v28  ;;  %v470_v39 = vshra.s32 %v1451_v32, 16 }
 0x166   :  { %v1443_v29 = vsel %vm261_vm7, %v1363_v2, 128 }
 0x167   :  { %v372_v30 = vshra.s32 %v1443_v29, 16  ;;  %v1466_v43 = vcvt.s32.f32 %v470_v39  ;;  %v317_v39 = vcvt.s32.f32 %v315_v8  ;;  %v371_v20 = vand.u32 65535, %v1443_v29 }
 0x169   :  { %v1448_v31 = vcvt.s32.f32 %v372_v30 }
 0x16a   :  { %v1453_v33 = vpop.xlane.xlu0 %251 }
 0x16b   :  { %2023 = vst [vmem:[#allocation14_spill] sm:$0xff] %v1453_v33  ;;  %vm269_vm9 = vcmp.ge.f32.partialorder %v1354_v60, %v1453_v33  ;;  %375 = vmin.xlane.f32.xlu0 %v1448_v31 }
 0x16c   :  { %v1459_v35 = vsel %vm269_vm9, %v1363_v2, 128 }
 0x16d   :  { %v484_v37 = vshra.s32 %v1459_v35, 16 }
 0x16f   :  { %v1463_v41 = vcvt.s32.f32 %v484_v37 }
 0x171   :  { %487 = vmin.xlane.f32.xlu1 %v1463_v41 }
 0x172   :  { %v1468_v45 = vpop.xlane.xlu0 %253 }
 0x173   :  { %2024 = vst [vmem:[#allocation15_spill] sm:$0xff] %v1468_v45  ;;  %vm270_vm10 = vcmp.ge.f32.partialorder %v1357_v62, %v1468_v45  ;;  %473 = vmin.xlane.f32.xlu0 %v1466_v43 }
 0x174   :  { %v1474_v47 = vsel %vm270_vm10, %v1363_v2, 128 }
 0x175   :  { %v498_v49 = vshra.s32 %v1474_v47, 16  ;;  %v497_v29 = vand.u32 65535, %v1474_v47 }
 0x177   :  { %v1477_v51 = vcvt.s32.f32 %v498_v49 }
 0x179   :  { %501 = vmin.xlane.f32.xlu2 %v1477_v51 }
 0x17a   :  { %v1480_v53 = vpop.xlane.xlu0 %237 }
 0x17b   :  { %vm262_vm11 = vcmp.ge.f32.partialorder %v1360_v0, %v1480_v53 }
 0x17c   :  { %v1490_v61 = vsel %vm262_vm11, %v1363_v2, 128 }
 0x17d   :  { %v386_v5 = vshra.s32 %v1490_v61, 16 }
 0x1ae   :  { %v1485_v57 = vpop.xlane.xlu1 %291 }
 0x1af   :  { %vm293_vm12 = vcmp.eq.f32.partialorder %v1373_v6, %v1485_v57  ;;  %v1502_v6 = vcvt.s32.f32 %v386_v5  ;;  %v298_v47 = vcvt.f32.s32 %v1485_v57 }
 0x1b0   :  { %v294_v63 = vsel %vm293_vm12, %v289_v59, inf }
 0x1b1   :  { %295 = vmin.xlane.f32.xlu1 %v294_v63 }
 0x1b6   :  { %v1494_v9 = vpop.xlane.xlu1 %247  ;;  %v1496_v4 = vpop.xlane.xlu2 %305 }
 0x1b7   :  { %vm267_vm13 = vcmp.ge.f32.partialorder %v1343_v52, %v1494_v9  ;;  %vm307_vm14 = vcmp.eq.f32.partialorder %v1384_v10, %v1496_v4 }
 0x1b8   :  { %v1505_v17 = vsel %vm267_vm13, %v1363_v2, 128  ;;  %v308_v21 = vsel %vm307_vm14, %v303_v13, inf }
 0x1b9   :  { %309 = vmin.xlane.f32.xlu2 %v308_v21  ;;  %389 = vmin.xlane.f32.xlu1 %v1502_v6  ;;  %v456_v25 = vshra.s32 %v1505_v17, 16 }
 0x1bb   :  { %v1518_v49 = vcvt.s32.f32 %v456_v25  ;;  %v329_v25 = vand.u32 65535, %v1406_v16 }
 0x1be   :  { %v1510_v30 = vpop.xlane.xlu1 %239  ;;  %v1512_v37 = vpop.xlane.xlu0 %319 }
 0x1bf   :  { %vm263_vm15 = vcmp.ge.f32.partialorder %v1323_v36, %v1510_v30  ;;  %v1516_v10 = vpop.xlane.xlu2 %245  ;;  %vm321_vm1 = vcmp.eq.f32.partialorder %v1396_v14, %v1512_v37 }
 0x1c0   :  { %v1523_v55 = vsel %vm263_vm15, %v1363_v2, 128  ;;  %vm266_vm2 = vcmp.ge.f32.partialorder %v1338_v48, %v1516_v10  ;;  %v322_v12 = vsel %vm321_vm1, %v317_v39, inf  ;;  %v373_v48 = vcvt.s32.f32 %v371_v20 }
 0x1c1   :  { %v1528_v59 = vsel %vm266_vm2, %v1363_v2, 128  ;;  %459 = vmin.xlane.f32.xlu2 %v1518_v49  ;;  %323 = vmin.xlane.f32.xlu0 %v322_v12  ;;  %v400_v1 = vshra.s32 %v1523_v55, 16  ;;  %v299_v20 = vshll.u32 %v298_v47, 16 }
 0x1c2   :  { %v442_v63 = vshra.s32 %v1528_v59, 16 }
 0x1c3   :  { %v1544_v8 = vcvt.s32.f32 %v400_v1  ;;  %v331_v1 = vcvt.s32.f32 %v329_v25  ;;  %v345_v25 = vcvt.s32.f32 %v343_v56  ;;  %v483_v56 = vand.u32 65535, %v1459_v35 }
 0x1c4   :  { %v1533_v5 = vcvt.s32.f32 %v442_v63  ;;  %v469_v35 = vand.u32 65535, %v1451_v32  ;;  %v1133_v32 = vmov 1.0  }
 0x1c6   :  { %445 = vmin.xlane.f32.xlu1 %v1533_v5  ;;  %v1536_v14 = vpop.xlane.xlu0 %241  ;;  %v1538_v13 = vpop.xlane.xlu1 %333 }
 0x1c7   :  { %v1540_v21 = vpop.xlane.xlu2 %243  ;;  %vm264_vm3 = vcmp.ge.f32.partialorder %v1328_v40, %v1536_v14  ;;  %vm335_vm5 = vcmp.eq.f32.partialorder %v1409_v18, %v1538_v13  ;;  %v357_v18 = vand.u32 65535, %v1430_v24 }
 0x1c8   :  { %vm265_vm4 = vcmp.ge.f32.partialorder %v1333_v44, %v1540_v21  ;;  %v1550_v39 = vsel %vm264_vm3, %v1363_v2, 128  ;;  %v336_v33 = vsel %vm335_vm5, %v331_v1, inf }
 0x1c9   :  { %v1553_v12 = vsel %vm265_vm4, %v1363_v2, 128  ;;  %403 = vmin.xlane.f32.xlu2 %v1544_v8  ;;  %v414_v60 = vshra.s32 %v1550_v39, 16 }
 0x1ca   :  { %v428_v63 = vshra.s32 %v1553_v12, 16 }
 0x1cb   :  { %v1565_v45 = vcvt.s32.f32 %v414_v60 }
 0x1cc   :  { %v1560_v16 = vcvt.s32.f32 %v428_v63 }
 0x1ce   :  { %337 = vmin.xlane.f32.xlu1 %v336_v33  ;;  %431 = vmin.xlane.f32.xlu0 %v1560_v16  ;;  %v359_v33 = vcvt.s32.f32 %v357_v18  ;;  %v485_v18 = vcvt.s32.f32 %v483_v56 }
 0x1cf   :  { %v1563_v62 = vpop.xlane.xlu2 %347 }
 0x1d0   :  { %vm349_vm6 = vcmp.eq.f32.partialorder %v1422_v22, %v1563_v62 }
 0x1d1   :  { %417 = vmin.xlane.f32.xlu2 %v1565_v45  ;;  %v350_v63 = vsel %vm349_vm6, %v345_v25, inf }
 0x1d6   :  { %351 = vmin.xlane.f32.xlu0 %v350_v63  ;;  %v1572_v1 = vpop.xlane.xlu0 %361  ;;  %v499_v63 = vcvt.s32.f32 %v497_v29 }
 0x1d7   :  { %vm363_vm7 = vcmp.eq.f32.partialorder %v1433_v26, %v1572_v1 }
 0x1d8   :  { %v364_v60 = vsel %vm363_vm7, %v359_v33, inf }
 0x1d9   :  { %365 = vmin.xlane.f32.xlu1 %v364_v60 }
 0x1de   :  { %v1577_v27 = vpop.xlane.xlu0 %375 }
 0x1df   :  { %vm377_vm8 = vcmp.eq.f32.partialorder %v1448_v31, %v1577_v27 }
 0x1e0   :  { %v378_v22 = vsel %vm377_vm8, %v373_v48, inf }
 0x1e1   :  { %379 = vmin.xlane.f32.xlu0 %v378_v22 }
 0x1e4   :  { %v1582_v24 = vpop.xlane.xlu1 %487 }
 0x1e5   :  { %vm489_vm9 = vcmp.eq.f32.partialorder %v1463_v41, %v1582_v24  ;;  %v471_v41 = vcvt.s32.f32 %v469_v35  ;;  %v326_v35 = vcvt.f32.s32 %v1512_v37 }
 0x1e6   :  { %v490_v26 = vsel %vm489_vm9, %v485_v18, inf  ;;  %v1591_v31 = vpop.xlane.xlu0 %473  ;;  %v312_v18 = vcvt.f32.s32 %v1496_v4 }
 0x1e7   :  { %491 = vmin.xlane.f32.xlu1 %v490_v26  ;;  %vm475_vm11 = vcmp.eq.f32.partialorder %v1466_v43, %v1591_v31  ;;  %v327_v47 = vshll.u32 %v326_v35, 16 }
 0x1e8   :  { %v476_v33 = vsel %vm475_vm11, %v471_v41, inf  ;;  %v313_v29 = vshll.u32 %v312_v18, 16  ;;  %v664_v41 = vsub.f32 %v1320_v34, %v1365_v3  ;;  %v399_v3 = vand.u32 65535, %v1523_v55 }
 0x1e9   :  { %v667_v55 = vsub.f32 %v1335_v46, %v1401_v15  ;;  %v413_v15 = vand.u32 65535, %v1550_v39  ;;  %v670_v39 = vsub.f32 %v1350_v58, %v1438_v28 }
 0x1ec   :  { %v1587_v25 = vpop.xlane.xlu2 %501 }
 0x1ed   :  { %vm503_vm10 = vcmp.eq.f32.partialorder %v1477_v51, %v1587_v25  ;;  %v385_v51 = vand.u32 65535, %v1490_v61 }
 0x1ee   :  { %v504_v48 = vsel %vm503_vm10, %v499_v63, inf }
 0x1ef   :  { %505 = vmin.xlane.f32.xlu2 %v504_v48  ;;  %v387_v26 = vcvt.s32.f32 %v385_v51  ;;  %v455_v48 = vand.u32 65535, %v1505_v17  ;;  %v665_v51 = vsub.f32 %v1325_v38, %v1376_v7 }
 0x1f1   :  { %v457_v37 = vcvt.s32.f32 %v455_v48 }
 0x1f7   :  { %477 = vmin.xlane.f32.xlu2 %v476_v33 }
 0x224   :  { %v296_v60 = vpop.xlane.xlu1 %295 }
 0x225   :  { %v297_v22 = vcvt.f32.s32 %v296_v60 }
 0x227   :  { %v1597_v56 = vadd.s32 %v299_v20, %v297_v22  ;;  %v441_v20 = vand.u32 65535, %v1528_v59 }
 0x229   :  { %vm511_vm12 = vcmp.eq.s32.totalorder %v1363_v2, %v1597_v56 }
 0x22a   :  { %911 = vmatmul.msk.f32.vlgmr.msra.gmra.mxu1 %vm511_vm12, %v1133_v32 }
 0x22c   :  { %v310_v43 = vpop.xlane.xlu2 %309  ;;  %v1607_v57 = vpop.xlane.xlu1 %389 }
 0x22d   :  { %v311_v63 = vcvt.f32.s32 %v310_v43  ;;  %vm391_vm13 = vcmp.eq.f32.partialorder %v1502_v6, %v1607_v57  ;;  %v1624_v6 = vstv %s2003_s0 }
 0x22e   :  { %v392_v61 = vsel %vm391_vm13, %v387_v26, inf  ;;  %v681_v34 = vmul.f32 %v1624_v6, %v664_v41  ;;  %v443_v26 = vcvt.s32.f32 %v441_v20  ;;  %v682_v38 = vmul.f32 %v1624_v6, %v665_v51 }
 0x22f   :  { %v1611_v4 = vadd.s32 %v313_v29, %v311_v63  ;;  %393 = vmin.xlane.f32.xlu0 %v392_v61  ;;  %v401_v29 = vcvt.s32.f32 %v399_v3  ;;  %v666_v63 = vsub.f32 %v1330_v42, %v1388_v11  ;;  %v427_v61 = vand.u32 65535, %v1553_v12 }
 0x230   :  { %v699_v35 = vmul.f32 1.442695, %v682_v38  ;;  %v684_v46 = vmul.f32 %v1624_v6, %v667_v55  ;;  %v668_v42 = vsub.f32 %v1340_v50, %v1414_v19  ;;  %v415_v50 = vcvt.s32.f32 %v413_v15 }
 0x231   :  { %vm512_vm14 = vcmp.eq.s32.totalorder %v1363_v2, %v1611_v4  ;;  %v683_v41 = vmul.f32 %v1624_v6, %v666_v63  ;;  %v669_v51 = vsub.f32 %v1345_v54, %v1425_v23  ;;  %v687_v54 = vmul.f32 %v1624_v6, %v670_v39  ;;  %v2027_v39 = vld [vmem:[#allocation10_spill] sm:$0xff] }
 0x232   :  { %912 = vmatmul.msk.f32.gmra.mxu1 %vm512_vm14, %v1133_v32  ;;  %v368_v55 = vcvt.f32.s32 %v1572_v1 }
 0x233   :  { %v701_v19 = vmul.f32 1.442695, %v683_v41  ;;  %v676_v41 = vsub.f32 %v1343_v52, %v1494_v9 }
 0x234   :  { %v1628_v33 = vpop.xlane.xlu2 %459  ;;  %v324_v17 = vpop.xlane.xlu0 %323  ;;  %v369_v1 = vshll.u32 %v368_v55, 16 }
 0x235   :  { %v325_v60 = vcvt.f32.s32 %v324_v17  ;;  %vm461_vm15 = vcmp.eq.f32.partialorder %v1518_v49, %v1628_v33  ;;  %v697_v49 = vmul.f32 1.442695, %v681_v34  ;;  %v354_v34 = vcvt.f32.s32 %v1563_v62 }
 0x236   :  { %v462_v22 = vsel %vm461_vm15, %v457_v37, inf  ;;  %v686_v62 = vmul.f32 %v1624_v6, %v669_v51 }
 0x237   :  { %v1635_v18 = vadd.s32 %v327_v47, %v325_v60  ;;  %463 = vmin.xlane.f32.xlu1 %v462_v22  ;;  %1017 = vpow2.f32 %v697_v49  ;;  %v703_v47 = vmul.f32 1.442695, %v684_v46  ;;  %v685_v22 = vmul.f32 %v1624_v6, %v668_v42 }
 0x238   :  { %1019 = vpow2.f32 %v699_v35  ;;  %v673_v49 = vsub.f32 %v1328_v40, %v1536_v14  ;;  %v674_v35 = vsub.f32 %v1333_v44, %v1540_v21 }
 0x239   :  { %v1639_v43 = vpop.xlane.xlu1 %445  ;;  %vm513_vm1 = vcmp.eq.s32.totalorder %v1363_v2, %v1635_v18  ;;  %1021 = vpow2.f32 %v703_v47  ;;  %v705_v28 = vmul.f32 1.442695, %v685_v22 }
 0x23a   :  { %913 = vmatmul.msk.f32.gmra.mxu1 %vm513_vm1, %v1133_v32  ;;  %vm447_vm2 = vcmp.eq.f32.partialorder %v1533_v5, %v1639_v43  ;;  %v340_v5 = vcvt.f32.s32 %v1538_v13  ;;  %1023 = vpow2.f32 %v701_v19  ;;  %v690_v14 = vmul.f32 %v1624_v6, %v673_v49 }
 0x23b   :  { %v448_v7 = vsel %vm447_vm2, %v443_v26, inf  ;;  %v355_v26 = vshll.u32 %v354_v34, 16  ;;  %1025 = vpow2.f32 %v705_v28  ;;  %v691_v44 = vmul.f32 %v1624_v6, %v674_v35 }
 0x23c   :  { %449 = vmin.xlane.f32.xlu2 %v448_v7  ;;  %v1652_v59 = vpop.xlane.xlu2 %403  ;;  %v341_v12 = vshll.u32 %v340_v5, 16  ;;  %v709_v7 = vmul.f32 1.442695, %v687_v54  ;;  %v715_v42 = vmul.f32 1.442695, %v690_v14  ;;  %v2029_v54 = vld [vmem:[#allocation12_spill] sm:$0xff]  ;;  %v494_v14 = vcvt.f32.s32 %v1582_v24 }
 0x23d   :  { %vm405_vm3 = vcmp.eq.f32.partialorder %v1544_v8, %v1652_v59  ;;  %v429_v8 = vcvt.s32.f32 %v427_v61  ;;  %v707_v61 = vmul.f32 1.442695, %v686_v62  ;;  %v717_v22 = vmul.f32 1.442695, %v691_v44 }
 0x23e   :  { %v406_v48 = vsel %vm405_vm3, %v401_v29, inf  ;;  %1027 = vpow2.f32 %v709_v7  ;;  %v480_v24 = vcvt.f32.s32 %v1591_v31 }
 0x23f   :  { %407 = vmin.xlane.f32.xlu0 %v406_v48  ;;  %1029 = vpow2.f32 %v707_v61 }
 0x240   :  { %v481_v31 = vshll.u32 %v480_v24, 16 }
 0x241   :  { %v338_v11 = vpop.xlane.xlu1 %337  ;;  %v1665_v17 = vpop.xlane.xlu0 %431 }
 0x242   :  { %v339_v37 = vcvt.f32.s32 %v338_v11  ;;  %vm433_vm4 = vcmp.eq.f32.partialorder %v1560_v16, %v1665_v17  ;;  %v1680_v16 = vpop.eup %1017  ;;  %v382_v11 = vcvt.f32.s32 %v1577_v27  ;;  %v693_v27 = vmul.f32 %v1624_v6, %v676_v41 }
 0x243   :  { %v434_v13 = vsel %vm433_vm4, %v429_v8, inf  ;;  %v1691_v23 = vpop.eup %1019 }
 0x244   :  { %v1671_v60 = vadd.s32 %v341_v12, %v339_v37  ;;  %435 = vmin.xlane.f32.xlu1 %v434_v13  ;;  %v1673_v20 = vpop.xlane.xlu2 %417  ;;  %v2025_v37 = vld [vmem:[#allocation9_spill] sm:$0xff]  ;;  %v383_v9 = vshll.u32 %v382_v11, 16  ;;  %v721_v62 = vmul.f32 1.442695, %v693_v27  ;;  %v495_v11 = vshll.u32 %v494_v14, 16 }
 0x245   :  { %vm419_vm5 = vcmp.eq.f32.partialorder %v1565_v45, %v1673_v20  ;;  %v671_v45 = vsub.f32 %v1360_v0, %v1480_v53  ;;  %v672_v0 = vsub.f32 %v1323_v36, %v1510_v30  ;;  %v1705_v53 = vpop.eup %1021  ;;  %v675_v13 = vsub.f32 %v2025_v37, %v1516_v10  ;;  %v2026_v10 = vld [vmem:[#allocation13_spill] sm:$0xff] }
 0x246   :  { %vm514_vm6 = vcmp.eq.s32.totalorder %v1363_v2, %v1671_v60  ;;  %v420_v58 = vsel %vm419_vm5, %v415_v50, inf  ;;  %v1709_v40 = vpop.eup %1023  ;;  %v677_v50 = vsub.f32 %v2027_v39, %v2026_v10  ;;  %v396_v39 = vcvt.f32.s32 %v1607_v57 }
 0x247   :  { %914 = vmatmul.msk.f32.gmra.mxu1 %vm514_vm6, %v1133_v32  ;;  %729 = vadd.xlane.f32.xlu0 %v1680_v16  ;;  %v688_v5 = vmul.f32 %v1624_v6, %v671_v45  ;;  %v689_v30 = vmul.f32 %v1624_v6, %v672_v0  ;;  %v1723_v15 = vpop.eup %1025  ;;  %v692_v19 = vmul.f32 %v1624_v6, %v675_v13 }
 0x248   :  { %421 = vmin.xlane.f32.xlu2 %v420_v58  ;;  %v1732_v21 = vpop.eup %1027  ;;  %v2028_v58 = vld [vmem:[#allocation15_spill] sm:$0xff]  ;;  %v694_v45 = vmul.f32 %v1624_v6, %v677_v50 }
 0x249   :  { %v352_v3 = vpop.xlane.xlu0 %351  ;;  %v711_v36 = vmul.f32 1.442695, %v688_v5  ;;  %v713_v12 = vmul.f32 1.442695, %v689_v30  ;;  %v1736_v52 = vpop.eup %1029  ;;  %v679_v28 = vsub.f32 %v2029_v54, %v2028_v58  ;;  %v719_v7 = vmul.f32 1.442695, %v692_v19 }
 0x24a   :  { %v353_v38 = vcvt.f32.s32 %v352_v3  ;;  %v2030_v3 = vld [vmem:[#allocation14_spill] sm:$0xff]  ;;  %v723_v0 = vmul.f32 1.442695, %v694_v45  ;;  %v397_v19 = vshll.u32 %v396_v39, 16  ;;  %v466_v54 = vcvt.f32.s32 %v1628_v33 }
 0x24b   :  { %1031 = vpow2.f32 %v711_v36  ;;  %v696_v61 = vmul.f32 %v1624_v6, %v679_v28 }
 0x24c   :  { %v1699_v29 = vadd.s32 %v355_v26, %v353_v38  ;;  %731 = vadd.xlane.f32.xlu1 %v1691_v23  ;;  %v366_v63 = vpop.xlane.xlu1 %365  ;;  %1033 = vpow2.f32 %v715_v42  ;;  %v2031_v26 = vld [vmem:[#allocation11_spill] sm:$0xff] }
 0x24d   :  { %v367_v48 = vcvt.f32.s32 %v366_v63  ;;  %1035 = vpow2.f32 %v713_v12  ;;  %v678_v38 = vsub.f32 %v2031_v26, %v2030_v3  ;;  %v508_v63 = vcvt.f32.s32 %v1587_v25 }
 0x24e   :  { %vm515_vm7 = vcmp.eq.s32.totalorder %v1363_v2, %v1699_v29  ;;  %1037 = vpow2.f32 %v717_v22  ;;  %v727_v41 = vmul.f32 1.442695, %v696_v61  ;;  %v452_v3 = vcvt.f32.s32 %v1639_v43 }
 0x24f   :  { %915 = vmatmul.msk.f32.gmra.mxu1 %vm515_vm7, %v1133_v32  ;;  %735 = vadd.xlane.f32.xlu0 %v1705_v53  ;;  %v1721_v46 = vadd.s32 %v369_v1, %v367_v48  ;;  %1039 = vpow2.f32 %v721_v62  ;;  %v695_v48 = vmul.f32 %v1624_v6, %v678_v38  ;;  %v509_v36 = vshll.u32 %v508_v63, 16 }
 0x250   :  { %733 = vadd.xlane.f32.xlu2 %v1709_v40  ;;  %1041 = vpow2.f32 %v719_v7  ;;  %v467_v62 = vshll.u32 %v466_v54, 16  ;;  %v410_v26 = vcvt.f32.s32 %v1652_v59  ;;  %v453_v63 = vshll.u32 %v452_v3, 16 }
 0x251   :  { %vm516_vm8 = vcmp.eq.s32.totalorder %v1363_v2, %v1721_v46  ;;  %v1750_v34 = vpop.eup %1031  ;;  %1043 = vpow2.f32 %v723_v0  ;;  %v725_v42 = vmul.f32 1.442695, %v695_v48  ;;  %v438_v48 = vcvt.f32.s32 %v1665_v17 }
 0x252   :  { %v1758_v49 = vpop.eup %1033  ;;  %1045 = vpow2.f32 %v727_v41 }
 0x253   :  { %v1762_v55 = vpop.eup %1035  ;;  %1047 = vpow2.f32 %v725_v42 }
 0x254   :  { %737 = vadd.xlane.f32.xlu1 %v1723_v15  ;;  %v380_v8 = vpop.xlane.xlu0 %379  ;;  %v1774_v1 = vpop.eup %1037 }
 0x255   :  { %v381_v47 = vcvt.f32.s32 %v380_v8  ;;  %v1779_v12 = vpop.eup %1039 }
 0x256   :  { %v1781_v6 = vpop.eup %1041 }
 0x257   :  { %916 = vmatmul.msk.f32.gmra.mxu1 %vm516_vm8, %v1133_v32  ;;  %741 = vadd.xlane.f32.xlu0 %v1732_v21  ;;  %v1748_v51 = vadd.s32 %v383_v9, %v381_v47  ;;  %v1794_v44 = vpop.eup %1043 }
 0x258   :  { %739 = vadd.xlane.f32.xlu2 %v1736_v52  ;;  %v1805_v9 = vpop.eup %1045 }
 0x259   :  { %vm517_vm9 = vcmp.eq.s32.totalorder %v1363_v2, %v1748_v51  ;;  %v1807_v10 = vpop.eup %1047 }
 0x25a   :  { %v492_v5 = vpop.xlane.xlu1 %491 }
 0x25b   :  { %v493_v30 = vcvt.f32.s32 %v492_v5  ;;  %v411_v5 = vshll.u32 %v410_v26, 16 }
 0x25c   :  { %743 = vadd.xlane.f32.xlu1 %v1750_v34 }
 0x25d   :  { %v1784_v37 = vadd.s32 %v495_v11, %v493_v30  ;;  %v439_v30 = vshll.u32 %v438_v48, 16 }
 0x25f   :  { %917 = vmatmul.msk.f32.gmra.mxu1 %vm517_vm9, %v1133_v32  ;;  %747 = vadd.xlane.f32.xlu0 %v1758_v49  ;;  %vm525_vm11 = vcmp.eq.s32.totalorder %v1363_v2, %v1784_v37 }
 0x260   :  { %745 = vadd.xlane.f32.xlu2 %v1762_v55 }
 0x262   :  { %v506_v25 = vpop.xlane.xlu2 %505 }
 0x263   :  { %v507_v35 = vcvt.f32.s32 %v506_v25 }
 0x264   :  { %749 = vadd.xlane.f32.xlu1 %v1774_v1 }
 0x265   :  { %v1777_v8 = vadd.s32 %v509_v36, %v507_v35  ;;  %v424_v35 = vcvt.f32.s32 %v1673_v20 }
 0x267   :  { %753 = vadd.xlane.f32.xlu0 %v1779_v12  ;;  %vm2017_vm10 = vcmp.eq.s32.totalorder %v1363_v2, %v1777_v8  ;;  %v425_v24 = vshll.u32 %v424_v35, 16 }
 0x268   :  { %751 = vadd.xlane.f32.xlu2 %v1781_v6  ;;  %927 = vmatpush.xpose.msk.msra.mxu2 %vm2017_vm10, %v1133_v32 }
 0x26a   :  { %v478_v13 = vpop.xlane.xlu2 %477 }
 0x26b   :  { %v479_v47 = vcvt.f32.s32 %v478_v13 }
 0x26c   :  { %755 = vadd.xlane.f32.xlu1 %v1794_v44  ;;  %928 = vmatpush.xpose.msk.msra.mxu2 %vm525_vm11, %v1133_v32 }
 0x26d   :  { %v1803_v27 = vadd.s32 %v481_v31, %v479_v47 }
 0x26f   :  { %759 = vadd.xlane.f32.xlu0 %v1805_v9  ;;  %vm524_vm13 = vcmp.eq.s32.totalorder %v1363_v2, %v1803_v27 }
 0x270   :  { %757 = vadd.xlane.f32.xlu2 %v1807_v10  ;;  %929 = vmatpush.xpose.msk.msra.mxu2 %vm524_vm13, %v1133_v32 }
 0x2a2   :  { %v394_v50 = vpop.xlane.xlu0 %393 }
 0x2a3   :  { %v395_v22 = vcvt.f32.s32 %v394_v50 }
 0x2a5   :  { %v1818_v58 = vadd.s32 %v397_v19, %v395_v22 }
 0x2a7   :  { %v576_v28 = vpop.f32.mrf.mxu1  ;;  %vm518_vm15 = vcmp.eq.s32.totalorder %v1363_v2, %v1818_v58 }
 0x2a8   :  { %624 = vst.msk [vmem:[%s2007_s4] sm:$0xff] %vm59_vm0, %v576_v28  ;;  %918 = vmatmul.msk.f32.gmra.mxu1 %vm518_vm15, %v1133_v32 }
 0x2aa   :  { %v464_v57 = vpop.xlane.xlu1 %463 }
 0x2ab   :  { %v465_v45 = vcvt.f32.s32 %v464_v57 }
 0x2ad   :  { %v1832_v33 = vadd.s32 %v467_v62, %v465_v45 }
 0x2af   :  { %v450_v38 = vpop.xlane.xlu2 %449  ;;  %v579_v7 = vpop.f32.mrf.mxu1  ;;  %vm523_vm2 = vcmp.eq.s32.totalorder %v1363_v2, %v1832_v33 }
 0x2b0   :  { %v451_v61 = vcvt.f32.s32 %v450_v38  ;;  %625 = vst.msk [vmem:[%s2007_s4 + $0x8] sm:$0xff] %vm59_vm0, %v579_v7  ;;  %930 = vmatpush.xpose.msk.msra.mxu2 %vm523_vm2, %v1133_v32 }
 0x2b2   :  { %v1845_v43 = vadd.s32 %v453_v63, %v451_v61  ;;  %v408_v59 = vpop.xlane.xlu0 %407 }
 0x2b3   :  { %v409_v0 = vcvt.f32.s32 %v408_v59 }
 0x2b4   :  { %vm522_vm3 = vcmp.eq.s32.totalorder %v1363_v2, %v1845_v43 }
 0x2b5   :  { %v412_v14 = vadd.s32 %v411_v5, %v409_v0  ;;  %931 = vmatpush.xpose.msk.msra.mxu2 %vm522_vm3, %v1133_v32 }
 0x2b7   :  { %v436_v25 = vpop.xlane.xlu1 %435  ;;  %v582_v36 = vpop.f32.mrf.mxu1  ;;  %vm519_vm4 = vcmp.eq.s32.totalorder %v1363_v2, %v412_v14 }
 0x2b8   :  { %v437_v41 = vcvt.f32.s32 %v436_v25  ;;  %626 = vst.msk [vmem:[%s2007_s4 + $0x10] sm:$0xff] %vm59_vm0, %v582_v36  ;;  %919 = vmatmul.msk.f32.gmra.mxu1 %vm519_vm4, %v1133_v32 }
 0x2ba   :  { %v440_v17 = vadd.s32 %v439_v30, %v437_v41  ;;  %v730_v42 = vpop.xlane.xlu0 %729 }
 0x2bb   :  { %v422_v11 = vpop.xlane.xlu2 %421  ;;  %1049 = vrcp.f32 %v730_v42 }
 0x2bc   :  { %v423_v13 = vcvt.f32.s32 %v422_v11  ;;  %vm521_vm5 = vcmp.eq.s32.totalorder %v1363_v2, %v440_v17 }
 0x2bd   :  { %932 = vmatpush.xpose.msk.msra.mxu2 %vm521_vm5, %v1133_v32 }
 0x2be   :  { %v426_v20 = vadd.s32 %v425_v24, %v423_v13  ;;  %v640_v13 = vcvt.s32.f32 %v1363_v2 }
 0x2bf   :  { %v732_v31 = vpop.xlane.xlu1 %731 }
 0x2c0   :  { %1051 = vrcp.f32 %v732_v31  ;;  %vm520_vm10 = vcmp.eq.s32.totalorder %v1363_v2, %v426_v20 }
 0x2c1   :  { %920 = vmatmul.msk.f32.gmra.mxu1 %vm520_vm10, %v1133_v32  ;;  %933 = vmatpush.xpose.msk.msra.mxu2 %vm520_vm10, %v1133_v32  ;;  %v1050_v50 = vpop.eup %1049 }
 0x2c2   :  { %v736_v47 = vpop.xlane.xlu0 %735  ;;  %v777_v54 = vmul.f32 %v1050_v50, %v1680_v16 }
 0x2c3   :  { %v734_v39 = vpop.xlane.xlu2 %733  ;;  %1053 = vrcp.f32 %v736_v47 }
 0x2c4   :  { %1055 = vrcp.f32 %v734_v39  ;;  %v585_v19 = vpop.f32.mrf.mxu1 }
 0x2c5   :  { %627 = vst.msk [vmem:[%s2007_s4 + $0x18] sm:$0xff] %vm59_vm0, %v585_v19  ;;  %934 = vmatpush.xpose.msk.msra.mxu2 %vm519_vm4, %v1133_v32 }
 0x2c6   :  { %v1052_v22 = vpop.eup %1051 }
 0x2c7   :  { %v778_v28 = vmul.f32 %v1052_v22, %v1691_v23  ;;  %v738_v57 = vpop.xlane.xlu1 %737 }
 0x2c8   :  { %1057 = vrcp.f32 %v738_v57 }
 0x2c9   :  { %v1054_v62 = vpop.eup %1053  ;;  %v946_v45 = vpack.c.bf16 %v778_v28, %v777_v54  ;;  %921 = vmatmul.msk.f32.gmra.mxu1 %vm521_vm5, %v1133_v32  ;;  %935 = vmatpush.xpose.msk.msra.mxu2 %vm518_vm15, %v1133_v32 }
 0x2ca   :  { %v1056_v3 = vpop.eup %1055  ;;  %v780_v26 = vmul.f32 %v1054_v62, %v1705_v53  ;;  %v742_v38 = vpop.xlane.xlu0 %741 }
 0x2cb   :  { %947 = vst [vmem:[#allocation5] sm:$0xff] %v946_v45   ;;  %v779_v16 = vmul.f32 %v1056_v3, %v1709_v40  ;;  %v740_v23 = vpop.xlane.xlu2 %739 }
 0x2cc   :  { %1059 = vrcp.f32 %v740_v23  ;;  %v588_v7 = vpop.f32.mrf.mxu1 }
 0x2cd   :  { %v951_v63 = vpack.c.bf16 %v780_v26, %v779_v16  ;;  %628 = vst.msk [vmem:[%s2007_s4 + $0x20] sm:$0xff] %vm59_vm0, %v588_v7  ;;  %936 = vmatpush.xpose.msk.msra.mxu2 %vm517_vm9, %v1133_v32  ;;  %1061 = vrcp.f32 %v742_v38 }
 0x2ce   :  { %v1058_v58 = vpop.eup %1057 }
 0x2cf   :  { %983 = vst [vmem:[#allocation5 + $0x8] sm:$0xff] %v951_v63   ;;  %v744_v53 = vpop.xlane.xlu1 %743  ;;  %v781_v51 = vmul.f32 %v1058_v58, %v1723_v15 }
 0x2d0   :  { %1063 = vrcp.f32 %v744_v53 }
 0x2d1   :  { %922 = vmatmul.msk.f32.gmra.mxu1 %vm522_vm3, %v1133_v32  ;;  %937 = vmatpush.xpose.msk.msra.mxu2 %vm516_vm8, %v1133_v32 }
 0x2d2   :  { %v1060_v40 = vpop.eup %1059  ;;  %v748_v61 = vpop.xlane.xlu0 %747 }
 0x2d3   :  { %v782_v59 = vmul.f32 %v1060_v40, %v1736_v52  ;;  %v746_v5 = vpop.xlane.xlu2 %745  ;;  %1065 = vrcp.f32 %v748_v61  ;;  %v1062_v0 = vpop.eup %1061 }
 0x2d4   :  { %1067 = vrcp.f32 %v746_v5  ;;  %v591_v48 = vpop.f32.mrf.mxu1  ;;  %v783_v15 = vmul.f32 %v1062_v0, %v1732_v21 }
 0x2d5   :  { %v956_v14 = vpack.c.bf16 %v782_v59, %v781_v51  ;;  %629 = vst.msk [vmem:[%s2007_s4 + $0x28] sm:$0xff] %vm59_vm0, %v591_v48  ;;  %938 = vmatpush.xpose.msk.msra.mxu2 %vm515_vm7, %v1133_v32 }
 0x2d6   :  { %v1064_v46 = vpop.eup %1063 }
 0x2d7   :  { %984 = vst [vmem:[#allocation5 + $0x10] sm:$0xff] %v956_v14   ;;  %v784_v52 = vmul.f32 %v1064_v46, %v1750_v34  ;;  %v750_v43 = vpop.xlane.xlu1 %749 }
 0x2d8   :  { %1069 = vrcp.f32 %v750_v43 }
 0x2d9   :  { %v1066_v25 = vpop.eup %1065  ;;  %v961_v36 = vpack.c.bf16 %v784_v52, %v783_v15  ;;  %923 = vmatmul.msk.f32.gmra.mxu1 %vm523_vm2, %v1133_v32  ;;  %939 = vmatpush.xpose.msk.msra.mxu2 %vm514_vm6, %v1133_v32 }
 0x2da   :  { %v1068_v29 = vpop.eup %1067  ;;  %v786_v30 = vmul.f32 %v1066_v25, %v1758_v49  ;;  %v754_v21 = vpop.xlane.xlu0 %753 }
 0x2db   :  { %985 = vst [vmem:[#allocation5 + $0x18] sm:$0xff] %v961_v36   ;;  %v785_v34 = vmul.f32 %v1068_v29, %v1762_v55  ;;  %v752_v35 = vpop.xlane.xlu2 %751 }
 0x2dc   :  { %1071 = vrcp.f32 %v752_v35  ;;  %v594_v41 = vpop.f32.mrf.mxu1 }
 0x2dd   :  { %v966_v17 = vpack.c.bf16 %v786_v30, %v785_v34  ;;  %630 = vst.msk [vmem:[%s2007_s4 + $0x30] sm:$0xff] %vm59_vm0, %v594_v41  ;;  %940 = vmatpush.xpose.msk.msra.mxu2 %vm513_vm1, %v1133_v32  ;;  %1073 = vrcp.f32 %v754_v21 }
 0x2de   :  { %v1070_v49 = vpop.eup %1069 }
 0x2df   :  { %986 = vst [vmem:[#allocation5 + $0x20] sm:$0xff] %v966_v17   ;;  %v756_v60 = vpop.xlane.xlu1 %755  ;;  %v787_v18 = vmul.f32 %v1070_v49, %v1774_v1 }
 0x2e0   :  { %1075 = vrcp.f32 %v756_v60 }
 0x2e1   :  { %924 = vmatmul.msk.f32.gmra.mxu1 %vm524_vm13, %v1133_v32  ;;  %941 = vmatpush.xpose.msk.msra.mxu2 %vm512_vm14, %v1133_v32 }
 0x2e2   :  { %v1072_v55 = vpop.eup %1071  ;;  %v760_v33 = vpop.xlane.xlu0 %759 }
 0x2e3   :  { %v788_v42 = vmul.f32 %v1072_v55, %v1781_v6  ;;  %v758_v11 = vpop.xlane.xlu2 %757  ;;  %1077 = vrcp.f32 %v760_v33  ;;  %v1074_v24 = vpop.eup %1073 }
 0x2e4   :  { %1079 = vrcp.f32 %v758_v11  ;;  %v789_v27 = vmul.f32 %v1074_v24, %v1779_v12 }
 0x2e5   :  { %v971_v20 = vpack.c.bf16 %v788_v42, %v787_v18  ;;  %942 = vmatpush.xpose.msk.msra.mxu2 %vm511_vm12, %v1133_v32  ;;  %vm2032_vm12 = vcmp.eq.s32.totalorder %v1363_v2, %v1777_v8 }
 0x2e6   :  { %v1076_v4 = vpop.eup %1075 }
 0x2e7   :  { %987 = vst [vmem:[#allocation5 + $0x28] sm:$0xff] %v971_v20   ;;  %v790_v1 = vmul.f32 %v1076_v4, %v1794_v44 }
 0x2e8   :  { %657 = vmatmul.f32.vlgmr.msra.gmra.mxu2 %v640_v13 }
 0x2e9   :  { %v1078_v6 = vpop.eup %1077  ;;  %v976_v31 = vpack.c.bf16 %v790_v1, %v789_v27  ;;  %925 = vmatmul.msk.f32.gmra.mxu1 %vm525_vm11, %v1133_v32 }
 0x2ea   :  { %v1080_v47 = vpop.eup %1079  ;;  %v792_v39 = vmul.f32 %v1078_v6, %v1805_v9 }
 0x2eb   :  { %988 = vst [vmem:[#allocation5 + $0x30] sm:$0xff] %v976_v31   ;;  %v791_v56 = vmul.f32 %v1080_v47, %v1807_v10 }
 0x2ed   :  { %v981_v50 = vpack.c.bf16 %v792_v39, %v791_v56 }
 0x2ef   :  { %989 = vst [vmem:[#allocation5 + $0x38] sm:$0xff] %v981_v50  }
 0x2f0   :  { %850 = dma.vmem_to_hbm [thread:$0]  %s843_s27, 1024, %s845_s29, [#allocation6], %s1135_s30, %s1135_s30, %s1136_s7  }
 0x2f1   :  { %926 = vmatmul.msk.f32.gmra.mxu1 %vm2032_vm12, %v1133_v32 }
 0x325   :  { %v597_v12 = vpop.f32.mrf.mxu1 }
 0x326   :  { %631 = vst.msk [vmem:[%s2007_s4 + $0x38] sm:$0xff] %vm59_vm0, %v597_v12 }
 0x335   :  { %v600_v37 = vpop.f32.mrf.mxu1 }
 0x336   :  { %632 = vst.msk [vmem:[%s2007_s4 + $0x40] sm:$0xff] %vm59_vm0, %v600_v37 }
 0x33e   :  { %v603_v2 = vpop.f32.mrf.mxu1 }
 0x33f   :  { %633 = vst.msk [vmem:[%s2007_s4 + $0x48] sm:$0xff] %vm59_vm0, %v603_v2 }
 0x346   :  { %v606_v32 = vpop.f32.mrf.mxu1 }
 0x347   :  { %634 = vst.msk [vmem:[%s2007_s4 + $0x50] sm:$0xff] %vm59_vm0, %v606_v32 }
 0x34e   :  { %v609_v8 = vpop.f32.mrf.mxu1 }
 0x34f   :  { %635 = vst.msk [vmem:[%s2007_s4 + $0x58] sm:$0xff] %vm59_vm0, %v609_v8 }
 0x356   :  { %v612_v44 = vpop.f32.mrf.mxu1 }
 0x357   :  { %636 = vst.msk [vmem:[%s2007_s4 + $0x60] sm:$0xff] %vm59_vm0, %v612_v44 }
 0x35e   :  { %v615_v9 = vpop.f32.mrf.mxu1 }
 0x35f   :  { %637 = vst.msk [vmem:[%s2007_s4 + $0x68] sm:$0xff] %vm59_vm0, %v615_v9 }
 0x366   :  { %v618_v10 = vpop.f32.mrf.mxu1 }
 0x367   :  { %638 = vst.msk [vmem:[%s2007_s4 + $0x70] sm:$0xff] %vm59_vm0, %v618_v10 }
 0x36b   :  { %v658_v19 = vpop.f32.mrf.mxu2 }
 0x36c   :  { %vm1006_vm14 = vcmp.lt.s32.totalorder %v658_v19, 0  ;;  %v1007_v22 = vceil.f32 %v658_v19  ;;  %v1008_v54 = vfloor.f32 %v658_v19 }
 0x36e   :  { %v621_v28 = vpop.f32.mrf.mxu1  ;;  %v1009_v57 = vsel %vm1006_vm14, %v1007_v22, %v1008_v54 }
 0x36f   :  { %639 = vst.msk [vmem:[%s2007_s4 + $0x78] sm:$0xff] %vm59_vm0, %v621_v28  ;;  %v1010_v62 = vcvt.f32.s32 %v1009_v57 }
 0x371   :  { %662 = vst [vmem:[#allocation3] sm:$0x1] %v1010_v62 }
 0x372   :  { %837 = dma.vmem_to_hbm [thread:$0]  %s833_s21, 16, %s835_s24, [#allocation4]  }
 0x373   :  { %1129 = dma.done.wait [#allocation4], 16  }
 0x374   :  { %1130 = vsyncadd [#allocation4], 4294967280 }
 0x375   :  { %1131 = dma.done.wait [#allocation6], 1024  }
 0x376   :  { %1132 = vsyncadd [#allocation6], 4294966272 }
 0x377   :  { %861 = vsyncpa [#allocation4], 1 }
 0x378   :  { %862 = vsyncpa [#allocation6], 1 }

</bundles_post_ra>
